<compile_context>
chip_gen: v7x
topology: tpu7x:2x2x1
jax: 0.10.0
libtpu: 0.0.40
codegen_flags: <defaults>
</compile_context>

<pallas_src>
import math
import functools

import jax
import jax.numpy as jnp
import numpy as np
from jax.experimental import pallas as pl
from jax.experimental.pallas import tpu as pltpu


def _mha_kernel(x_ref, *rest, num_head: int, tq: int, has_mask: bool):
    # x_ref:   (1, S, E) bf16   full sequence for this batch element (resident across qi)
    # mask_ref:(1, TQ, S) int8  1 = attend, 0 = masked            (only if has_mask)
    # wq/wk/wv:(H, E, D)  bf16  head-packed, pre-transposed projection weights
    # bq/bk/bv:(H, 1, D)  f32
    # wo_ref:  (H, D, E)  bf16  head-packed out-proj weight (rows of Wout^T)
    # bo_ref:  (1, E)     f32
    # o_ref:   (1, TQ, E) f32
    # k_scr/v_scr: (H, S, D) bf16 VMEM scratch (cached K/V, written at qi == 0)
    if has_mask:
        (mask_ref, wq_ref, wk_ref, wv_ref, bq_ref, bk_ref, bv_ref,
         wo_ref, bo_ref, o_ref, k_scr, v_scr) = rest
    else:
        mask_ref = None
        (wq_ref, wk_ref, wv_ref, bq_ref, bk_ref, bv_ref,
         wo_ref, bo_ref, o_ref, k_scr, v_scr) = rest

    H = num_head
    S = x_ref.shape[1]
    E = x_ref.shape[2]
    D = E // H
    scale = 1.0 / math.sqrt(D)
    qi = pl.program_id(1)

    # ---- K/V projection: once per batch element, cached in bf16 VMEM scratch ---------
    @pl.when(qi == 0)
    def _():
        xf = x_ref[0]                                                  # (S, E) bf16
        k = jnp.einsum('se,hed->hsd', xf, wk_ref[...],
                       preferred_element_type=jnp.float32) + bk_ref[...]
        v = jnp.einsum('se,hed->hsd', xf, wv_ref[...],
                       preferred_element_type=jnp.float32) + bv_ref[...]
        k_scr[...] = k.astype(jnp.bfloat16)
        v_scr[...] = v.astype(jnp.bfloat16)

    # ---- Q projection for this query block (rows sliced from the resident x block) ---
    start = pl.multiple_of(qi * tq, tq)
    xq = x_ref[0, pl.ds(start, tq), :]                                 # (TQ, E) bf16
    q = jnp.einsum('te,hed->htd', xq, wq_ref[...],
                   preferred_element_type=jnp.float32) + bq_ref[...]   # (H, TQ, D) f32
    # Fold 1/sqrt(D) into q, then go straight to bf16 (only consumed by the MXU).
    q = (q * scale).astype(jnp.bfloat16)

    # ---- scores + f32 softmax ---------------------------------------------------------
    s = jnp.einsum('htd,hsd->hts', q, k_scr[...],
                   preferred_element_type=jnp.float32)                 # (H, TQ, S) f32
    if has_mask:
        # 0 = attend, -1e30 = masked; built once, shared by every head.
        bias = (mask_ref[0].astype(jnp.float32) - 1.0) * 1e30          # (TQ, S)
        s = s + bias[None, :, :]
    m = jnp.max(s, axis=-1, keepdims=True)
    p = jnp.exp(s - m)
    denom = jnp.sum(p, axis=-1, keepdims=True)                         # (H, TQ, 1)

    av = jnp.einsum('hts,hsd->htd', p.astype(jnp.bfloat16), v_scr[...],
                    preferred_element_type=jnp.float32)                # (H, TQ, D)
    av = (av * pl.reciprocal(denom, approx=True)).astype(jnp.bfloat16)

    # ---- out-projection: one batched MXU contraction, reduced over heads --------------
    out = jnp.einsum('htd,hde->hte', av, wo_ref[...],
                     preferred_element_type=jnp.float32)               # (H, TQ, E)
    out = jnp.sum(out, axis=0) + bo_ref[...]                           # (TQ, E)

    # Note: for sub-128 E (toy config) this store is lane-masked; pad E in production.
    o_ref[0] = out.astype(o_ref.dtype)


def _choose_tq(seq_len: int, num_head: int) -> int:
    # Cap tq so the f32 scores + probabilities (2 * H * tq * S * 4 B) stay under ~16 MiB,
    # leaving headroom for activations / weights / K-V scratch even on v7x (64 MiB VMEM).
    budget = 16 * 1024 * 1024
    for cand in (512, 256, 128):
        if seq_len > cand and seq_len % cand == 0:
            if 2 * num_head * cand * seq_len * 4 <= budget:
                return cand
    return seq_len


def _vmem_limit_bytes(S, E, H, D, tq, has_mask) -> int:
    est = 0
    est += 2 * S * E * 2                       # x block (bf16, double-buffered)
    if has_mask:
        est += 2 * tq * S                      # int8 mask block (double-buffered)
    est += 2 * (3 * H * E * D * 2 + H * D * E * 2 + 3 * H * D * 4 + E * 4)  # weights
    est += 2 * H * S * D * 2                   # K/V scratch (bf16)
    est += 2 * H * tq * S * 4                  # scores + probs (f32)
    est += 4 * H * tq * D * 4                  # q / av intermediates
    est += 2 * H * tq * E * 4                  # out-proj intermediate + output block
    est = 2 * est + (4 << 20)                  # headroom for relayouts / spills
    return int(min(max(est, 8 << 20), 64 << 20))   # never exceed v7x physical VMEM


def multi_head_attention(x, attn_mask, params, *, num_head, tq=None):
    """x: [B, S, E] f32; attn_mask: [B, S, S] bool (True = attend) or None.

    params = (wqkv, bqkv, wout, bout) in torch nn.Linear layout:
        wqkv (3E, E), bqkv (3E,), wout (E, E), bout (E,).
    """
    B, S, E = x.shape
    H = num_head
    assert E % H == 0
    D = E // H
    wqkv, bqkv, wout, bout = params

    # --- head-packed, pre-transposed weights (done once in the wrapper) ---------------
    # torch: qkv = x @ wqkv.T + bqkv, feature index = k*E + h*D + d  (k in {q,k,v})
    w_t = wqkv.T                                                     # (E, 3E)
    wq_h = w_t[:, 0 * E:1 * E].reshape(E, H, D).transpose(1, 0, 2)   # (H, E, D)
    wk_h = w_t[:, 1 * E:2 * E].reshape(E, H, D).transpose(1, 0, 2)
    wv_h = w_t[:, 2 * E:3 * E].reshape(E, H, D).transpose(1, 0, 2)
    bq_h = bqkv[0 * E:1 * E].reshape(H, 1, D)
    bk_h = bqkv[1 * E:2 * E].reshape(H, 1, D)
    bv_h = bqkv[2 * E:3 * E].reshape(H, 1, D)
    wo_h = wout.T.reshape(H, D, E)                                   # (H, D, E)
    bo = bout.reshape(1, E)

    # bf16 MXU operands (accumulation stays f32 in-kernel); biases stay f32.
    wq_h = wq_h.astype(jnp.bfloat16)
    wk_h = wk_h.astype(jnp.bfloat16)
    wv_h = wv_h.astype(jnp.bfloat16)
    wo_h = wo_h.astype(jnp.bfloat16)

    # Stream activations in bf16 (cast once here; output stays f32).
    x_bf16 = x.astype(jnp.bfloat16)

    if tq is None:
        tq = _choose_tq(S, H)
    assert S % tq == 0
    n_q = S // tq

    has_mask = attn_mask is not None
    kernel = functools.partial(_mha_kernel, num_head=H, tq=tq, has_mask=has_mask)

    in_specs = [pl.BlockSpec((1, S, E), lambda b, qi: (b, 0, 0))]    # x (resident per b)
    args = [x_bf16]
    if has_mask:
        in_specs.append(pl.BlockSpec((1, tq, S), lambda b, qi: (b, qi, 0)))
        args.append(attn_mask.astype(jnp.int8))                     # 1 = attend
    in_specs += [
        pl.BlockSpec((H, E, D), lambda b, qi: (0, 0, 0)),            # Wq (resident)
        pl.BlockSpec((H, E, D), lambda b, qi: (0, 0, 0)),            # Wk
        pl.BlockSpec((H, E, D), lambda b, qi: (0, 0, 0)),            # Wv
        pl.BlockSpec((H, 1, D), lambda b, qi: (0, 0, 0)),            # bq
        pl.BlockSpec((H, 1, D), lambda b, qi: (0, 0, 0)),            # bk
        pl.BlockSpec((H, 1, D), lambda b, qi: (0, 0, 0)),            # bv
        pl.BlockSpec((H, D, E), lambda b, qi: (0, 0, 0)),            # Wout (head-packed)
        pl.BlockSpec((1, E), lambda b, qi: (0, 0)),                  # bout
    ]
    args += [wq_h, wk_h, wv_h, bq_h, bk_h, bv_h, wo_h, bo]

    # TODO(synk): on VMEM-tight configs, single-buffer the constant-index weight blocks
    # (pl.Buffered(1) / manual sync_copy into scratch) to reclaim their second buffer.
    return pl.pallas_call(
        kernel,
        out_shape=jax.ShapeDtypeStruct((B, S, E), x.dtype),
        grid_spec=pltpu.PrefetchScalarGridSpec(
            num_scalar_prefetch=0,
            grid=(B, n_q),
            in_specs=in_specs,
            out_specs=pl.BlockSpec((1, tq, E), lambda b, qi: (b, qi, 0)),
            scratch_shapes=[
                pltpu.VMEM((H, S, D), jnp.bfloat16),   # cached K
                pltpu.VMEM((H, S, D), jnp.bfloat16),   # cached V
            ],
        ),
        compiler_params=pltpu.CompilerParams(
            # qi must be sequential (scratch K/V written at qi == 0 is reused by later
            # blocks); batch stays parallel so both v7x TensorCores get work.
            dimension_semantics=("parallel", "arbitrary"),
            vmem_limit_bytes=_vmem_limit_bytes(S, E, H, D, tq, has_mask),
        ),
    )(*args)


def _reference(x, attn_mask, params, num_head):
    """Pure-JAX f32 reference matching the PyTorch module semantics."""
    B, S, E = x.shape
    wqkv, bqkv, wout, bout = params
    D = E // num_head
    qkv = x @ wqkv.T + bqkv                                 # (B, S, 3E)
    qkv = qkv.reshape(B, S, 3, num_head, D)                 # (b t k h d)
    qkv = jnp.transpose(qkv, (0, 2, 3, 1, 4))               # (b k h t d)
    q, k, v = qkv[:, 0], qkv[:, 1], qkv[:, 2]               # (B, H, S, D)
    s = jnp.einsum('bhtd,bhsd->bhts', q, k) / math.sqrt(D)
    if attn_mask is not None:
        s = jnp.where(attn_mask[:, None, :, :], s, -1e30)
    p = jax.nn.softmax(s, axis=-1)
    av = jnp.einsum('bhts,bhsd->bhtd', p, v)                # (B, H, S, D)
    av = jnp.transpose(av, (0, 2, 1, 3)).reshape(B, S, E)   # 'b h t d -> b t (h d)'
    return av @ wout.T + bout


if __name__ == "__main__":
    B, S, E, H = 2, 8, 32, 4

    key = jax.random.PRNGKey(0)
    kx, kw1, kb1, kw2, kb2, km = jax.random.split(key, 6)

    x = jax.random.normal(kx, (B, S, E), jnp.float32)

    # Deterministic parameter init (nn.Linear-like uniform bounds).
    bound1 = 1.0 / math.sqrt(E)
    wqkv = jax.random.uniform(kw1, (3 * E, E), jnp.float32, -bound1, bound1)
    bqkv = jax.random.uniform(kb1, (3 * E,), jnp.float32, -bound1, bound1)
    wout = jax.random.uniform(kw2, (E, E), jnp.float32, -bound1, bound1)
    bout = jax.random.uniform(kb2, (E,), jnp.float32, -bound1, bound1)
    params = (wqkv, bqkv, wout, bout)

    # Boolean attention mask (True = attend); guarantee no fully-masked rows
    # by forcing the diagonal to True.
    mask = jax.random.bernoulli(km, 0.7, (B, S, S))
    mask = mask | jnp.eye(S, dtype=bool)[None]

    # Masked path.
    out = multi_head_attention(x, mask, params, num_head=H)
    out = jax.block_until_ready(out)
    ref = _reference(x, mask, params, H)
    # bf16 MXU operands + approx reciprocal -> loosen tolerance vs f32 reference.
    np.testing.assert_allclose(np.asarray(out), np.asarray(ref),
                               rtol=2e-2, atol=2e-2)

    # Specialized no-mask path (no mask tensor is ever materialized or streamed).
    out_nm = multi_head_attention(x, None, params, num_head=H)
    out_nm = jax.block_until_ready(out_nm)
    ref_nm = _reference(x, None, params, H)
    np.testing.assert_allclose(np.asarray(out_nm), np.asarray(ref_nm),
                               rtol=2e-2, atol=2e-2)

    print("KERNEL_OK")
</pallas_src>

<mosaic_0001>
module attributes {stable_mosaic.version = 11 : i64} {
  func.func @_mha_kernel(%arg0: i32, %arg1: i32, %arg2: memref<1x8x32xbf16, #tpu.memory_space<vmem>>, %arg3: memref<1x8x8xi8, #tpu.memory_space<vmem>>, %arg4: memref<4x32x8xbf16, #tpu.memory_space<vmem>>, %arg5: memref<4x32x8xbf16, #tpu.memory_space<vmem>>, %arg6: memref<4x32x8xbf16, #tpu.memory_space<vmem>>, %arg7: memref<4x1x8xf32, #tpu.memory_space<vmem>>, %arg8: memref<4x1x8xf32, #tpu.memory_space<vmem>>, %arg9: memref<4x1x8xf32, #tpu.memory_space<vmem>>, %arg10: memref<4x8x32xbf16, #tpu.memory_space<vmem>>, %arg11: memref<1x32xf32, #tpu.memory_space<vmem>>, %arg12: memref<1x8x32xf32, #tpu.memory_space<vmem>>, %arg13: memref<4x8x8xbf16, #tpu.memory_space<vmem>>, %arg14: memref<4x8x8xbf16, #tpu.memory_space<vmem>>) attributes {dimension_semantics = [#tpu.dimension_semantics<parallel>, #tpu.dimension_semantics<arbitrary>], iteration_bounds = array<i64: 2, 1>, scalar_prefetch = 0 : i64, scratch_operands = 2 : i64, tpu.core_type = #tpu.core_type<tc>, window_params = [{transform_indices = @transform_0, window_bounds = array<i64: 1, 8, 32>}, {transform_indices = @transform_1, window_bounds = array<i64: 1, 8, 8>}, {pipeline_mode = #tpu.pipeline_mode<synchronous>, transform_indices = @transform_2, window_bounds = array<i64: 4, 32, 8>}, {pipeline_mode = #tpu.pipeline_mode<synchronous>, transform_indices = @transform_3, window_bounds = array<i64: 4, 32, 8>}, {pipeline_mode = #tpu.pipeline_mode<synchronous>, transform_indices = @transform_4, window_bounds = array<i64: 4, 32, 8>}, {pipeline_mode = #tpu.pipeline_mode<synchronous>, transform_indices = @transform_5, window_bounds = array<i64: 4, 1, 8>}, {pipeline_mode = #tpu.pipeline_mode<synchronous>, transform_indices = @transform_6, window_bounds = array<i64: 4, 1, 8>}, {pipeline_mode = #tpu.pipeline_mode<synchronous>, transform_indices = @transform_7, window_bounds = array<i64: 4, 1, 8>}, {pipeline_mode = #tpu.pipeline_mode<synchronous>, transform_indices = @transform_8, window_bounds = array<i64: 4, 8, 32>}, {pipeline_mode = #tpu.pipeline_mode<synchronous>, transform_indices = @transform_9, window_bounds = array<i64: 1, 32>}, {transform_indices = @transform_10, window_bounds = array<i64: 1, 8, 32>}]} {
    %c0_i32 = arith.constant 0 : i32
    %0 = arith.cmpi eq, %arg1, %c0_i32 : i32
    %1 = arith.extui %0 : i1 to i32
    %c0_i32_0 = arith.constant 0 : i32
    %2 = arith.cmpi ne, %1, %c0_i32_0 : i32
    scf.if %2 {
      %c0_34 = arith.constant 0 : index
      %c0_35 = arith.constant 0 : index
      %c0_36 = arith.constant 0 : index
      %52 = vector.load %arg2[%c0_34, %c0_35, %c0_36] : memref<1x8x32xbf16, #tpu.memory_space<vmem>>, vector<1x8x32xbf16>
      %53 = vector.shape_cast %52 : vector<1x8x32xbf16> to vector<8x32xbf16>
      %c0_37 = arith.constant 0 : index
      %c0_38 = arith.constant 0 : index
      %c0_39 = arith.constant 0 : index
      %54 = vector.load %arg5[%c0_37, %c0_38, %c0_39] : memref<4x32x8xbf16, #tpu.memory_space<vmem>>, vector<4x32x8xbf16>
      "tpu.trace_start"() <{level = 10 : i32, message = "se,hed->hsd"}> : () -> ()
      %cst_40 = arith.constant dense<0.000000e+00> : vector<4x8x8xf32>
      %55 = tpu.matmul %54, %53, %cst_40 {dimension_numbers = #tpu.dot_dimension_numbers<[1], [1], [0, 2], [0], [0, 0, 0, 2, 1, 0], [], []>} : vector<4x32x8xbf16>, vector<8x32xbf16>, vector<4x8x8xf32> -> vector<4x8x8xf32>
      %56 = tpu.transpose %55, [0, 2, 1] : vector<4x8x8xf32> -> vector<4x8x8xf32>
      "tpu.trace_stop"() : () -> ()
      %c0_41 = arith.constant 0 : index
      %c0_42 = arith.constant 0 : index
      %c0_43 = arith.constant 0 : index
      %57 = vector.load %arg8[%c0_41, %c0_42, %c0_43] : memref<4x1x8xf32, #tpu.memory_space<vmem>>, vector<4x1x8xf32>
      %58 = vector.broadcast %57 : vector<4x1x8xf32> to vector<4x8x8xf32>
      %59 = arith.addf %56, %58 : vector<4x8x8xf32>
      %c0_44 = arith.constant 0 : index
      %c0_45 = arith.constant 0 : index
      %c0_46 = arith.constant 0 : index
      %60 = vector.load %arg6[%c0_44, %c0_45, %c0_46] : memref<4x32x8xbf16, #tpu.memory_space<vmem>>, vector<4x32x8xbf16>
      "tpu.trace_start"() <{level = 10 : i32, message = "se,hed->hsd"}> : () -> ()
      %cst_47 = arith.constant dense<0.000000e+00> : vector<4x8x8xf32>
      %61 = tpu.matmul %60, %53, %cst_47 {dimension_numbers = #tpu.dot_dimension_numbers<[1], [1], [0, 2], [0], [0, 0, 0, 2, 1, 0], [], []>} : vector<4x32x8xbf16>, vector<8x32xbf16>, vector<4x8x8xf32> -> vector<4x8x8xf32>
      %62 = tpu.transpose %61, [0, 2, 1] : vector<4x8x8xf32> -> vector<4x8x8xf32>
      "tpu.trace_stop"() : () -> ()
      %c0_48 = arith.constant 0 : index
      %c0_49 = arith.constant 0 : index
      %c0_50 = arith.constant 0 : index
      %63 = vector.load %arg9[%c0_48, %c0_49, %c0_50] : memref<4x1x8xf32, #tpu.memory_space<vmem>>, vector<4x1x8xf32>
      %64 = vector.broadcast %63 : vector<4x1x8xf32> to vector<4x8x8xf32>
      %65 = arith.addf %62, %64 : vector<4x8x8xf32>
      %66 = arith.truncf %59 : vector<4x8x8xf32> to vector<4x8x8xbf16>
      %c0_51 = arith.constant 0 : index
      %c0_52 = arith.constant 0 : index
      %c0_53 = arith.constant 0 : index
      %67 = vector.load %arg13[%c0_51, %c0_52, %c0_53] : memref<4x8x8xbf16, #tpu.memory_space<vmem>>, vector<4x8x8xbf16>
      tpu.vector_store %arg13[%c0_51, %c0_52, %c0_53], %66 {strides = array<i32>} : memref<4x8x8xbf16, #tpu.memory_space<vmem>>, vector<4x8x8xbf16>,
      %68 = arith.truncf %65 : vector<4x8x8xf32> to vector<4x8x8xbf16>
      %c0_54 = arith.constant 0 : index
      %c0_55 = arith.constant 0 : index
      %c0_56 = arith.constant 0 : index
      %69 = vector.load %arg14[%c0_54, %c0_55, %c0_56] : memref<4x8x8xbf16, #tpu.memory_space<vmem>>, vector<4x8x8xbf16>
      tpu.vector_store %arg14[%c0_54, %c0_55, %c0_56], %68 {strides = array<i32>} : memref<4x8x8xbf16, #tpu.memory_space<vmem>>, vector<4x8x8xbf16>,
    } else {
    }
    %c8_i32 = arith.constant 8 : i32
    %3 = arith.muli %arg1, %c8_i32 : i32
    %4 = tpu.assume_multiple %3, 8 : i32
    %c0 = arith.constant 0 : index
    %5 = arith.index_cast %4 : i32 to index
    %c0_1 = arith.constant 0 : index
    %6 = vector.load %arg2[%c0, %5, %c0_1] : memref<1x8x32xbf16, #tpu.memory_space<vmem>>, vector<1x8x32xbf16>
    %7 = vector.shape_cast %6 : vector<1x8x32xbf16> to vector<8x32xbf16>
    %c0_2 = arith.constant 0 : index
    %c0_3 = arith.constant 0 : index
    %c0_4 = arith.constant 0 : index
    %8 = vector.load %arg4[%c0_2, %c0_3, %c0_4] : memref<4x32x8xbf16, #tpu.memory_space<vmem>>, vector<4x32x8xbf16>
    "tpu.trace_start"() <{level = 10 : i32, message = "te,hed->htd"}> : () -> ()
    %cst = arith.constant dense<0.000000e+00> : vector<4x8x8xf32>
    %9 = tpu.matmul %8, %7, %cst {dimension_numbers = #tpu.dot_dimension_numbers<[1], [1], [0, 2], [0], [0, 0, 0, 2, 1, 0], [], []>} : vector<4x32x8xbf16>, vector<8x32xbf16>, vector<4x8x8xf32> -> vector<4x8x8xf32>
    %10 = tpu.transpose %9, [0, 2, 1] : vector<4x8x8xf32> -> vector<4x8x8xf32>
    "tpu.trace_stop"() : () -> ()
    %c0_5 = arith.constant 0 : index
    %c0_6 = arith.constant 0 : index
    %c0_7 = arith.constant 0 : index
    %11 = vector.load %arg7[%c0_5, %c0_6, %c0_7] : memref<4x1x8xf32, #tpu.memory_space<vmem>>, vector<4x1x8xf32>
    %12 = vector.broadcast %11 : vector<4x1x8xf32> to vector<4x8x8xf32>
    %13 = arith.addf %10, %12 : vector<4x8x8xf32>
    %cst_8 = arith.constant 0.353553385 : f32
    %14 = vector.broadcast %cst_8 : f32 to vector<4x8x8xf32>
    %15 = arith.mulf %13, %14 : vector<4x8x8xf32>
    %16 = arith.truncf %15 : vector<4x8x8xf32> to vector<4x8x8xbf16>
    %c0_9 = arith.constant 0 : index
    %c0_10 = arith.constant 0 : index
    %c0_11 = arith.constant 0 : index
    %17 = vector.load %arg13[%c0_9, %c0_10, %c0_11] : memref<4x8x8xbf16, #tpu.memory_space<vmem>>, vector<4x8x8xbf16>
    "tpu.trace_start"() <{level = 10 : i32, message = "htd,hsd->hts"}> : () -> ()
    %cst_12 = arith.constant dense<0.000000e+00> : vector<4x8x8xf32>
    %18 = tpu.matmul %16, %17, %cst_12 {dimension_numbers = #tpu.dot_dimension_numbers<[2], [2], [1], [1], [0, 0, 0, 1, 1, 1], [0], [0]>} : vector<4x8x8xbf16>, vector<4x8x8xbf16>, vector<4x8x8xf32> -> vector<4x8x8xf32>
    "tpu.trace_stop"() : () -> ()
    %c0_13 = arith.constant 0 : index
    %c0_14 = arith.constant 0 : index
    %c0_15 = arith.constant 0 : index
    %19 = vector.load %arg3[%c0_13, %c0_14, %c0_15] : memref<1x8x8xi8, #tpu.memory_space<vmem>>, vector<1x8x8xi8>
    %20 = vector.shape_cast %19 : vector<1x8x8xi8> to vector<8x8xi8>
    %21 = arith.sitofp %20 : vector<8x8xi8> to vector<8x8xf32>
    %cst_16 = arith.constant 1.000000e+00 : f32
    %22 = vector.broadcast %cst_16 : f32 to vector<8x8xf32>
    %23 = arith.subf %21, %22 : vector<8x8xf32>
    %cst_17 = arith.constant 1.000000e+30 : f32
    %24 = vector.broadcast %cst_17 : f32 to vector<8x8xf32>
    %25 = arith.mulf %23, %24 : vector<8x8xf32>
    %26 = vector.shape_cast %25 : vector<8x8xf32> to vector<1x8x8xf32>
    %27 = vector.broadcast %26 : vector<1x8x8xf32> to vector<4x8x8xf32>
    %28 = arith.addf %18, %27 : vector<4x8x8xf32>
    %cst_18 = arith.constant dense<0xFF800000> : vector<4x8xf32>
    %29 = vector.multi_reduction <maximumf>, %28, %cst_18 [2] : vector<4x8x8xf32> to vector<4x8xf32>
    %30 = vector.shape_cast %29 : vector<4x8xf32> to vector<4x8x1xf32>
    %31 = vector.broadcast %30 : vector<4x8x1xf32> to vector<4x8x8xf32>
    %32 = arith.subf %28, %31 : vector<4x8x8xf32>
    %33 = math.exp %32 : vector<4x8x8xf32>
    %cst_19 = arith.constant dense<0.000000e+00> : vector<4x8xf32>
    %34 = vector.multi_reduction <add>, %33, %cst_19 [2] : vector<4x8x8xf32> to vector<4x8xf32>
    %35 = vector.shape_cast %34 : vector<4x8xf32> to vector<4x8x1xf32>
    %36 = arith.truncf %33 : vector<4x8x8xf32> to vector<4x8x8xbf16>
    %c0_20 = arith.constant 0 : index
    %c0_21 = arith.constant 0 : index
    %c0_22 = arith.constant 0 : index
    %37 = vector.load %arg14[%c0_20, %c0_21, %c0_22] : memref<4x8x8xbf16, #tpu.memory_space<vmem>>, vector<4x8x8xbf16>
    "tpu.trace_start"() <{level = 10 : i32, message = "hts,hsd->htd"}> : () -> ()
    %cst_23 = arith.constant dense<0.000000e+00> : vector<4x8x8xf32>
    %38 = tpu.matmul %36, %37, %cst_23 {dimension_numbers = #tpu.dot_dimension_numbers<[2], [1], [1], [2], [0, 0, 0, 1, 1, 2], [0], [0]>} : vector<4x8x8xbf16>, vector<4x8x8xbf16>, vector<4x8x8xf32> -> vector<4x8x8xf32>
    "tpu.trace_stop"() : () -> ()
    %39 = tpu.reciprocal %35 {approx = true} : vector<4x8x1xf32> -> vector<4x8x1xf32>
    %40 = vector.broadcast %39 : vector<4x8x1xf32> to vector<4x8x8xf32>
    %41 = arith.mulf %38, %40 : vector<4x8x8xf32>
    %42 = arith.truncf %41 : vector<4x8x8xf32> to vector<4x8x8xbf16>
    %c0_24 = arith.constant 0 : index
    %c0_25 = arith.constant 0 : index
    %c0_26 = arith.constant 0 : index
    %43 = vector.load %arg10[%c0_24, %c0_25, %c0_26] : memref<4x8x32xbf16, #tpu.memory_space<vmem>>, vector<4x8x32xbf16>
    "tpu.trace_start"() <{level = 10 : i32, message = "htd,hde->hte"}> : () -> ()
    %cst_27 = arith.constant dense<0.000000e+00> : vector<4x8x32xf32>
    %44 = tpu.matmul %42, %43, %cst_27 {dimension_numbers = #tpu.dot_dimension_numbers<[2], [1], [1], [2], [0, 0, 0, 1, 1, 2], [0], [0]>} : vector<4x8x8xbf16>, vector<4x8x32xbf16>, vector<4x8x32xf32> -> vector<4x8x32xf32>
    "tpu.trace_stop"() : () -> ()
    %cst_28 = arith.constant dense<0.000000e+00> : vector<8x32xf32>
    %45 = vector.multi_reduction <add>, %44, %cst_28 [0] : vector<4x8x32xf32> to vector<8x32xf32>
    %c0_29 = arith.constant 0 : index
    %c0_30 = arith.constant 0 : index
    %46 = vector.load %arg11[%c0_29, %c0_30] : memref<1x32xf32, #tpu.memory_space<vmem>>, vector<1x32xf32>
    %47 = vector.broadcast %46 : vector<1x32xf32> to vector<8x32xf32>
    %48 = arith.addf %45, %47 : vector<8x32xf32>
    %c0_31 = arith.constant 0 : index
    %c0_32 = arith.constant 0 : index
    %c0_33 = arith.constant 0 : index
    %49 = vector.load %arg12[%c0_31, %c0_32, %c0_33] : memref<1x8x32xf32, #tpu.memory_space<vmem>>, vector<1x8x32xf32>
    %50 = vector.shape_cast %49 : vector<1x8x32xf32> to vector<8x32xf32>
    %51 = vector.shape_cast %48 : vector<8x32xf32> to vector<1x8x32xf32>
    tpu.vector_store %arg12[%c0_31, %c0_32, %c0_33], %51 {strides = array<i32>} : memref<1x8x32xf32, #tpu.memory_space<vmem>>, vector<1x8x32xf32>,
    return
  }
  func.func @transform_0(%arg0: i32, %arg1: i32) -> (i32, i32, i32) {
    %c0_i32 = arith.constant 0 : i32
    %c0_i32_0 = arith.constant 0 : i32
    %c0_i32_1 = arith.constant 0 : i32
    return %arg0, %c0_i32, %c0_i32_0 : i32, i32, i32
  }
  func.func @transform_1(%arg0: i32, %arg1: i32) -> (i32, i32, i32) {
    %c0_i32 = arith.constant 0 : i32
    %c0_i32_0 = arith.constant 0 : i32
    return %arg0, %arg1, %c0_i32 : i32, i32, i32
  }
  func.func @transform_2(%arg0: i32, %arg1: i32) -> (i32, i32, i32) {
    %c0_i32 = arith.constant 0 : i32
    %c0_i32_0 = arith.constant 0 : i32
    %c0_i32_1 = arith.constant 0 : i32
    %c0_i32_2 = arith.constant 0 : i32
    return %c0_i32, %c0_i32_0, %c0_i32_1 : i32, i32, i32
  }
  func.func @transform_3(%arg0: i32, %arg1: i32) -> (i32, i32, i32) {
    %c0_i32 = arith.constant 0 : i32
    %c0_i32_0 = arith.constant 0 : i32
    %c0_i32_1 = arith.constant 0 : i32
    %c0_i32_2 = arith.constant 0 : i32
    return %c0_i32, %c0_i32_0, %c0_i32_1 : i32, i32, i32
  }
  func.func @transform_4(%arg0: i32, %arg1: i32) -> (i32, i32, i32) {
    %c0_i32 = arith.constant 0 : i32
    %c0_i32_0 = arith.constant 0 : i32
    %c0_i32_1 = arith.constant 0 : i32
    %c0_i32_2 = arith.constant 0 : i32
    return %c0_i32, %c0_i32_0, %c0_i32_1 : i32, i32, i32
  }
  func.func @transform_5(%arg0: i32, %arg1: i32) -> (i32, i32, i32) {
    %c0_i32 = arith.constant 0 : i32
    %c0_i32_0 = arith.constant 0 : i32
    %c0_i32_1 = arith.constant 0 : i32
    %c0_i32_2 = arith.constant 0 : i32
    return %c0_i32, %c0_i32_0, %c0_i32_1 : i32, i32, i32
  }
  func.func @transform_6(%arg0: i32, %arg1: i32) -> (i32, i32, i32) {
    %c0_i32 = arith.constant 0 : i32
    %c0_i32_0 = arith.constant 0 : i32
    %c0_i32_1 = arith.constant 0 : i32
    %c0_i32_2 = arith.constant 0 : i32
    return %c0_i32, %c0_i32_0, %c0_i32_1 : i32, i32, i32
  }
  func.func @transform_7(%arg0: i32, %arg1: i32) -> (i32, i32, i32) {
    %c0_i32 = arith.constant 0 : i32
    %c0_i32_0 = arith.constant 0 : i32
    %c0_i32_1 = arith.constant 0 : i32
    %c0_i32_2 = arith.constant 0 : i32
    return %c0_i32, %c0_i32_0, %c0_i32_1 : i32, i32, i32
  }
  func.func @transform_8(%arg0: i32, %arg1: i32) -> (i32, i32, i32) {
    %c0_i32 = arith.constant 0 : i32
    %c0_i32_0 = arith.constant 0 : i32
    %c0_i32_1 = arith.constant 0 : i32
    %c0_i32_2 = arith.constant 0 : i32
    return %c0_i32, %c0_i32_0, %c0_i32_1 : i32, i32, i32
  }
  func.func @transform_9(%arg0: i32, %arg1: i32) -> (i32, i32) {
    %c0_i32 = arith.constant 0 : i32
    %c0_i32_0 = arith.constant 0 : i32
    %c0_i32_1 = arith.constant 0 : i32
    return %c0_i32, %c0_i32_0 : i32, i32
  }
  func.func @transform_10(%arg0: i32, %arg1: i32) -> (i32, i32, i32) {
    %c0_i32 = arith.constant 0 : i32
    %c0_i32_0 = arith.constant 0 : i32
    return %arg0, %arg1, %c0_i32 : i32, i32, i32
  }
}

</mosaic_0001>

<bundles_post_ra>
// kernel: tpu_custom_call.1
= control target key start
LH: loop header
LB: loop body
LE: loop exit
PB: predicated region body
PF: predicated region fallthrough
CT: control target
= control target key end

     0   :  { %15 = vsyncpa [#allocation5], 0  ;;  %s3010_s0 = inlined_call_operand.vmem [shape: bf16[2,8,32], index: 0, kind: input, shape index: {}]   ;;  %s3011_s1 = inlined_call_operand.vmem [shape: s8[2,8,8], index: 1, kind: input, shape index: {}]   ;;  %s3012_s2 = inlined_call_operand.vmem [shape: bf16[4,32,8], index: 2, kind: input, shape index: {}]   ;;  %s3013_s3 = inlined_call_operand.vmem [shape: bf16[4,32,8], index: 3, kind: input, shape index: {}]   ;;  %s3014_s4 = inlined_call_operand.vmem [shape: bf16[4,32,8], index: 4, kind: input, shape index: {}]   ;;  %s3015_s5 = inlined_call_operand.vmem [shape: f32[4,1,8], index: 5, kind: input, shape index: {}]   ;;  %s3016_s6 = inlined_call_operand.vmem [shape: f32[4,1,8], index: 6, kind: input, shape index: {}]   ;;  %s3017_s7 = inlined_call_operand.vmem [shape: f32[4,1,8], index: 7, kind: input, shape index: {}]   ;;  %s3018_s8 = inlined_call_operand.vmem [shape: bf16[4,8,32], index: 8, kind: input, shape index: {}]   ;;  %s3019_s9 = inlined_call_operand.vmem [shape: f32[1,32], index: 9, kind: input, shape index: {}]   ;;  %s3020_s10 = inlined_call_operand.hbm [shape: f32[2,8,32], index: 10, kind: output, shape index: {}]  }
   0x1   :  { %17 = vsyncpa [#allocation5 + $0x1], 0  ;;  %s2676_s13 = smov 0   ;;  %s2678_s14 = smov 0  }
   0x2   :  { %s2680_s15 = smov 0   ;;  %s2682_s16 = smov 0  }
   0x3   :  { %s2684_s17 = smov 0   ;;  %s2686_s18 = smov 0  }
   0x4 LB: > { %3023 = sst [smem:[#allocation7_spill]] %s2612_s17  ;;  %s2240_s19 = sadd.s32 4294967295, %s2616_s18   ;;  %s2616_s18 = sphi %s2686_s18, %s23_s18   ;;  %s2612_s17 = sphi %s2684_s17, %s3028_s17   ;;  %s2608_s16 = sphi %s2682_s16, %s3027_s16   ;;  %s2604_s15 = sphi %s2680_s15, %s3031_s15   ;;  %s2600_s14 = sphi %s2678_s14, %s3030_s14   ;;  %s2596_s13 = sphi %s2676_s13, %s3029_s13  }
   0x5   : > { %s2241_s20 = sadd.s32 4294967294, %s2616_s18   ;;  %s35_s21 = sadd.s32 1, %s2612_s17 }
   0x6   : > { %s266_s22 = sadd.s32 1, %s2604_s15  ;;  %p37_p0 = scmp.ge.s32.totalorder %s35_s21, 2 }
   0x7   : > { %p276_p1 = scmp.ne.s32.totalorder %s2604_s15, %s2600_s14  ;;  %p277_p2 = scmp.eq.s32.totalorder %s2240_s19, 1 }
   0x8   : > { %p282_p3 = scmp.ne.s32.totalorder %s2600_s14, %s2596_s13  ;;  %s3033_s21 = smov (%p37_p0, %s35_s21), 0 }
   0x9   : > { %3024 = sst [smem:[#allocation8_spill]] %s3033_s21  ;;  %p2716_p4 = por %p277_p2, %p276_p1 }
   0xa   : > { %p283_p5 = scmp.eq.s32.totalorder %s2241_s20, 1  ;;  %s261_s24 = ssub.s32 %s2612_s17, %s3033_s21 }
   0xb   : > { %p2244_p6 = scmp.ge.s32.totalorder %s2616_s18, 1  ;;  %p264_p7 = scmp.eq.s32.totalorder %s261_s24, 0 }
   0xc   : > { %p2723_p8 = por %p283_p5, %p282_p3  ;;  %p342_p9 = scmp.lt.s32.totalorder %s2616_s18, 3 }
   0xd   : > { %s2729_s26 = scalar_select %p264_p7, %s2604_s15, %s266_s22  }
   0xe   : > { %p343_p10 = pnand %p2244_p6, %p342_p9 }
   0xf   : > { %v2498_v0 = vld [vmem:[%s3013_s3 + $0x10] sm:$0xff] (!%p343_p10)   ;;  %p386_p11 = scmp.lt.s32.totalorder (!%p343_p10), %s2608_s16, 1  ;;  %v2499_v1 = vld [vmem:[%s3013_s3] sm:$0xff] (!%p343_p10)   ;;  %v2500_v2 = vld [vmem:[%s3013_s3 + $0x18] sm:$0xff] (!%p343_p10)   ;;  %vm541_vm0 = vcmask (!%p343_p10), 261120   ;;  %v2618_v44 = vmov (!%p343_p10), 0.0  }
  0x10   : > { %346 = sbr.rel (%p343_p10) target bundleno = 1405 (0x57d), region = 60  ;;  %483 = vxpose.xlu1.c.b16.start [1/2] (short) (narrow) (!%p343_p10), %v2498_v0, 16  ;;  %467 = vxpose.xlu0.c.b16.start [1/2] (short) (narrow) (!%p343_p10), %v2499_v1, 16  ;;  %v2501_v3 = vld [vmem:[%s3013_s3 + $0x8] sm:$0xff] (!%p343_p10)   ;;  %v2502_v4 = vld [vmem:[%s3013_s3 + $0x30] sm:$0xff] (!%p343_p10)   ;;  %v2503_v5 = vld [vmem:[%s3013_s3 + $0x20] sm:$0xff] (!%p343_p10)  }
  0x11   : > { %v2504_v6 = vld [vmem:[%s3013_s3 + $0x38] sm:$0xff] (!%p343_p10)   ;;  %v2505_v7 = vld [vmem:[%s3013_s3 + $0x28] sm:$0xff] (!%p343_p10)   ;;  %v2506_v8 = vld [vmem:[%s3012_s2 + $0x10] sm:$0xff] (!%p343_p10)   ;;  %vm2619_vm1 = vmmov (!%p343_p10), 0   ;;  %vm1117_vm2 = vcmask (!%p343_p10), 60416   ;;  %vm1510_vm3 = vcmask (!%p343_p10), 64512  }
  0x12   : > { %v2507_v9 = vld [vmem:[%s3012_s2] sm:$0xff] (!%p343_p10)   ;;  %v2508_v13 = vld [vmem:[%s3012_s2 + $0x18] sm:$0xff] (!%p343_p10)   ;;  %v2509_v14 = vld [vmem:[%s3012_s2 + $0x8] sm:$0xff] (!%p343_p10)   ;;  %vm1742_vm4 = vcmask (!%p343_p10), 1043456   ;;  %s383_s24 = sand.u32 (!%p343_p10), 1, %s2600_s14   ;;  %s2620_s22 = smov (!%p343_p10), [#allocation4]  }
  0x13   : > { %v2510_v15 = vld [vmem:[%s3012_s2 + $0x30] sm:$0xff] (!%p343_p10)   ;;  %v2511_v16 = vld [vmem:[%s3012_s2 + $0x20] sm:$0xff] (!%p343_p10)   ;;  %v2512_v17 = vld [vmem:[%s3012_s2 + $0x38] sm:$0xff] (!%p343_p10)   ;;  %s2245_s28 = sshll.u32 (!%p343_p10), %s383_s24, 3  ;;  %s2141_s20 = scalar_lea.sflag (!%p343_p10), [#allocation5], %s383_s24 }
  0x14   : > { %484 = vxpose.xlu1.c.b16.end [2/2] (short) (narrow) (!%p343_p10), %v2500_v2, 16  ;;  %468 = vxpose.xlu0.c.b16.end [2/2] (short) (narrow) (!%p343_p10), %v2501_v3, 16  ;;  %v2513_v18 = vld [vmem:[%s3012_s2 + $0x28] sm:$0xff] (!%p343_p10)   ;;  %v2514_v19 = vld [vmem:[%s3014_s4 + $0x10] sm:$0xff] (!%p343_p10)   ;;  %v2516_v20 = vld [vmem:[%s3014_s4] sm:$0xff] (!%p343_p10)  }
  0x15   : > { %v2515_v21 = vld [vmem:[%s3014_s4 + $0x18] sm:$0xff] (!%p343_p10)   ;;  %v2517_v22 = vld [vmem:[%s3014_s4 + $0x8] sm:$0xff] (!%p343_p10)   ;;  %v2518_v48 = vld [vmem:[%s3014_s4 + $0x30] sm:$0xff] (!%p343_p10)  }
  0x16   : > { %v2519_v49 = vld [vmem:[%s3014_s4 + $0x20] sm:$0xff] (!%p343_p10)   ;;  %v2520_v50 = vld [vmem:[%s3014_s4 + $0x38] sm:$0xff] (!%p343_p10)   ;;  %v2521_v51 = vld [vmem:[%s3014_s4 + $0x28] sm:$0xff] (!%p343_p10)  }
  0x17   : > { %s2748_s27 = scalar_select %p386_p11, %s2608_s16, 1  ;;  %v2260_v52 = vld [vmem:[%s3016_s6] ss:$0 sm:$0xff]  ;;  %v2261_v54 = vld [vmem:[%s3016_s6 + $0x1] ss:$0 sm:$0xff] }
  0x18   : > { %515 = vxpose.xlu1.c.b16.start [1/2] (short) (narrow) %v2502_v4, 16  ;;  %499 = vxpose.xlu0.c.b16.start [1/2] (short) (narrow) %v2503_v5, 16  ;;  %v2262_v3 = vld [vmem:[%s3016_s6 + $0x2] ss:$0 sm:$0xff]  ;;  %v2263_v5 = vld [vmem:[%s3016_s6 + $0x3] ss:$0 sm:$0xff] }
  0x19   : > { %s2246_s12 = sshll.u32 %s2748_s27, 2  ;;  %s2247_s11 = sshll.u32 %s2748_s27, 1 }
  0x1a   : > { %s389_s21 = scalar_lea.vmem %s3010_s0, %s2246_s12  ;;  %s396_s19 = scalar_lea.vmem %s3011_s1, %s2247_s11 }
  0x1b   : > { %v402_v10 = vld [vmem:[%s389_s21] sm:$0xf]  ;;  %s2311_s11 = sshll.u32 %s2608_s16, 7  ;;  %s385_s12 = scalar_lea.vmem [#allocation4], %s2245_s28 }
  0x1c   : > { %516 = vxpose.xlu1.c.b16.end [2/2] (short) (narrow) %v2504_v6, 16  ;;  %500 = vxpose.xlu0.c.b16.end [2/2] (short) (narrow) %v2505_v7, 16  ;;  %v1135_v11 = vld [vmem:[%s389_s21] sm:$0xf]  ;;  %v549_v12 = vsel %vm541_vm0, %v402_v10, 0  ;;  %s2155_s17 = sshll.u32 %s385_s12, 4  ;;  %s2962_s21 = scalar_lea.hbm %s3020_s10, %s2311_s11  ;;  %s2964_s17 = int_to_ptr.vmem [resolvable:$true] %s2155_s17 }
  0x1d   : > { %2437 = vmatprep.subr.msk.bf16.mxu0 %vm541_vm0, %v402_v10  ;;  %2438 = vmatprep.subr.msk.bf16.mxu1 %vm541_vm0, %v402_v10  ;;  %v1282_v29 = vsel %vm541_vm0, %v1135_v11, 0  ;;  %s2538_s16 = scalar_lea.vmem %s2964_s17, 128  ;;  %s2542_s28 = sshll.u32 %s2620_s22, 4  ;;  %s2543_s28 = int_to_ptr.vmem [resolvable:$false] %s2542_s28 }
  0x1e   : > { %2348 = vmatpush3.bf16.xpose.msra.mxu0 %v549_v12  ;;  %2354 = vmatpush3.bf16.xpose.msra.mxu1 %v549_v12  ;;  %p2539_p12 = scmp.ne.s32.totalorder %s2964_s17, %s2538_s16  ;;  %s2544_s29 = scalar_lea.vmem %s2543_s28, 256 }
  0x1f   : > { %2439 = vmatprep.subr.msk.bf16.mxu0 %vm541_vm0, %v1135_v11  ;;  %2365 = vmatprep.subr.bf16.mxu1 %v2618_v44  ;;  %p2545_p1 = scmp.lt.s32.totalorder %s2964_s17, %s2543_s28  ;;  %p2546_p2 = scmp.lt.s32.totalorder %s2544_s29, %s2538_s16 }
  0x20   : > { %1216 = vxpose.xlu1.c.b16.start [1/2] (short) (narrow) %v2506_v8, 16  ;;  %1200 = vxpose.xlu0.c.b16.start [1/2] (short) (narrow) %v2507_v9, 16  ;;  %v2292_v8 = vld [vmem:[%s3015_s5] ss:$0 sm:$0xff]  ;;  %p2540_p13 = pnand %p2539_p12, %p2716_p4 }
  0x21   : > { %p2547_p3 = por %p2546_p2, %p2545_p1 }
  0x22   : > { %p2541_p0 = pneg %p2540_p13 }
  0x24   : > { %1217 = vxpose.xlu1.c.b16.end [2/2] (short) (narrow) %v2508_v13, 16  ;;  %1201 = vxpose.xlu0.c.b16.end [2/2] (short) (narrow) %v2509_v14, 16  ;;  %v2293_v14 = vld [vmem:[%s3015_s5 + $0x1] ss:$0 sm:$0xff]  ;;  %p2548_p5 = pnand %p2547_p3, %p2541_p0 }
  0x28   : > { %1248 = vxpose.xlu1.c.b16.start [1/2] (short) (narrow) %v2510_v15, 16  ;;  %1232 = vxpose.xlu0.c.b16.start [1/2] (short) (narrow) %v2511_v16, 16  ;;  %v2294_v15 = vld [vmem:[%s3015_s5 + $0x2] ss:$0 sm:$0xff] }
  0x2c   : > { %1249 = vxpose.xlu1.c.b16.end [2/2] (short) (narrow) %v2512_v17, 16  ;;  %1233 = vxpose.xlu0.c.b16.end [2/2] (short) (narrow) %v2513_v18, 16 }
  0x30   : > { %840 = vxpose.xlu1.c.b16.start [1/2] (short) (narrow) %v2514_v19, 16  ;;  %824 = vxpose.xlu0.c.b16.start [1/2] (short) (narrow) %v2516_v20, 16 }
  0x34   : > { %841 = vxpose.xlu1.c.b16.end [2/2] (short) (narrow) %v2515_v21, 16  ;;  %825 = vxpose.xlu0.c.b16.end [2/2] (short) (narrow) %v2517_v22, 16  ;;  %v2295_v22 = vld [vmem:[%s3015_s5 + $0x3] ss:$0 sm:$0xff] }
  0x76   : > { %v491_v23 = vpop.trf.xlu1  ;;  %v475_v24 = vpop.trf.xlu0 }
  0x77   : > { %v2256_v25 = vcombine.low %v475_v24, %v491_v23 }
  0x79   : > { %2349 = vmatprep.mubr.msk.bf16.mxu0 %vm541_vm0, %v2256_v25 }
  0x7e   : > { %v523_v26 = vpop.trf.xlu1  ;;  %v507_v27 = vpop.trf.xlu0 }
  0x7f   : > { %v2257_v28 = vcombine.low %v507_v27, %v523_v26 }
  0x81   : > { %2350 = vmatmul.mubr.msk.bf16.vlgmr.msra.gmra.mrb[0].mxu0 %vm541_vm0, %v2257_v28 }
  0x82   : > { %2360 = vmatpush3.bf16.xpose.msra.mxu0 %v1282_v29 }
  0x83   : > { %2371 = vmatprep.subr.bf16.mxu0 %v2618_v44 }
  0x86   : > { %v1224_v30 = vpop.trf.xlu1  ;;  %v1208_v31 = vpop.trf.xlu0 }
  0x87   : > { %v2288_v32 = vcombine.low %v1208_v31, %v1224_v30 }
  0x89   : > { %2361 = vmatprep.mubr.msk.bf16.mxu0 %vm541_vm0, %v2288_v32 }
  0x8e   : > { %v1256_v33 = vpop.trf.xlu1  ;;  %v1240_v34 = vpop.trf.xlu0 }
  0x8f   : > { %v2289_v35 = vcombine.low %v1240_v34, %v1256_v33 }
  0x91   : > { %2362 = vmatmul.mubr.msk.bf16.vlgmr.msra.gmra.mrb[4].mxu0 %vm541_vm0, %v2289_v35 }
  0x92   : > { %2373 = vmatprep.mubr.msk.bf16.mxu0 %vm2619_vm1, %v2618_v44 }
  0x96   : > { %v848_v36 = vpop.trf.xlu1  ;;  %v832_v37 = vpop.trf.xlu0 }
  0x97   : > { %v2272_v38 = vcombine.low %v832_v37, %v848_v36 }
  0x99   : > { %2355 = vmatprep.mubr.msk.bf16.mxu1 %vm541_vm0, %v2272_v38 }
 0x154   : > { %v2351_v39 = vpop.f32.mrb[0].mxu0 }
 0x155   : > { %v585_v40 = vpop.f32.mrb[1].mxu0 }
 0x156   : > { %600 = vxpose.xlu0.b32.start.end [1/1] (short) (narrow) %v585_v40, 8  ;;  %v2352_v41 = vpop.f32.mrb[2].mxu0 }
 0x157   : > { %v588_v42 = vpop.f32.mrb[3].mxu0 }
 0x158   : > { %632 = vxpose.xlu1.b32.start.end [1/1] (short) (narrow) %v588_v42, 8 }
 0x164   : > { %v2363_v43 = vpop.f32.mrb[4].mxu0 }
 0x165   : > { %v1318_v45 = vpop.f32.mrb[5].mxu0 }
 0x166   : > { %v2364_v46 = vpop.f32.mrb[6].mxu0 }
 0x167   : > { %v1321_v47 = vpop.f32.mrb[7].mxu0 }
 0x176   : > { %872 = vxpose.xlu1.c.b16.start [1/2] (short) (narrow) %v2518_v48, 16 }
 0x17a   : > { %856 = vxpose.xlu0.c.b16.start [1/2] (short) (narrow) %v2519_v49, 16  ;;  %873 = vxpose.xlu1.c.b16.end [2/2] (short) (narrow) %v2520_v50, 16 }
 0x17e   : > { %857 = vxpose.xlu0.c.b16.end [2/2] (short) (narrow) %v2521_v51, 16 }
 0x182   : > { %664 = vxpose.xlu0.b32.start.end [1/1] (short) (narrow) %v2351_v39, 8  ;;  %v1505_v39 = vld [vmem:[%s396_s19] sm:$0x3] }
 0x183   : > { %v1506_v40 = vunpack.c.0.s8 %v1505_v39 }
 0x184   : > { %696 = vxpose.xlu1.b32.start.end [1/1] (short) (narrow) %v2352_v41, 8 }
 0x185   : > { %v1507_v41 = vcvt.s32.f32 %v1506_v40 }
 0x186   : > { %1333 = vxpose.xlu0.b32.start.end [1/1] (short) (narrow) %v1318_v45, 8 }
 0x187   : > { %v2296_v42 = vadd.f32 -1.0, %v1507_v41 }
 0x188   : > { %1397 = vxpose.xlu1.b32.start.end [1/1] (short) (narrow) %v2363_v43, 8 }
 0x189   : > { %v1509_v43 = vmul.f32 1e+30, %v2296_v42  ;;  %v2277_v42 = vld [vmem:[%s3017_s7 + $0x1] ss:$0 sm:$0xff] }
 0x18a   : > { %1365 = vxpose.xlu0.b32.start.end [1/1] (short) (narrow) %v1321_v47, 8 }
 0x18e   : > { %1429 = vxpose.xlu0.b32.start.end [1/1] (short) (narrow) %v2364_v46, 8 }
 0x1d6   : > { %v616_v53 = vpop.trf.xlu0 }
 0x1d7   : > { %v756_v55 = vadd.f32 %v2260_v52, %v616_v53 }
 0x1d8   : > { %v648_v56 = vpop.trf.xlu1 }
 0x1d9   : > { %v1113_v57 = vpack.c.bf16 %v756_v55, %v756_v55  ;;  %v757_v58 = vadd.f32 %v2261_v54, %v648_v56 }
 0x1db   : > { %1118 = vst.msk [vmem:[#allocation2] sm:$0xf] %vm1117_vm2, %v1113_v57  ;;  %v1114_v59 = vpack.c.bf16 %v757_v58, %v757_v58 }
 0x1dc   : > { %v880_v60 = vpop.trf.xlu1 }
 0x1dd   : > { %1119 = vst.msk [vmem:[#allocation2 + $0x4] sm:$0xf] %vm1117_vm2, %v1114_v59 }
 0x1e0   : > { %v864_v61 = vpop.trf.xlu0 }
 0x1e1   : > { %v2273_v62 = vcombine.low %v864_v61, %v880_v60 }
 0x1e2   : > { %v1501_v63 = vld [vmem:[#allocation2] sm:$0xf] }
 0x1e3   : > { %2356 = vmatmul.mubr.msk.bf16.vlgmr.msra.gmra.mrb[0].mxu1 %vm541_vm0, %v2273_v62  ;;  %v1515_v0 = vsel %vm1510_vm3, %v1501_v63, 0 }
 0x1e4   : > { %2366 = vmatpush3.bf16.xpose.msra.mxu1 %v1515_v0  ;;  %v1502_v1 = vld [vmem:[#allocation2 + $0x4] sm:$0xf]  ;;  %2367 = vmatprep.mubr.msk.bf16.mxu1 %vm2619_vm1, %v2618_v44 }
 0x1e5   : > { %v1561_v2 = vsel %vm1510_vm3, %v1502_v1, 0  ;;  %2377 = vmatprep.subr.bf16.mxu1 %v2618_v44 }
 0x1e6   : > { %2372 = vmatpush3.bf16.xpose.msra.mxu0 %v1561_v2 }
 0x1e7   : > { %2383 = vmatprep.subr.bf16.mxu0 %v2618_v44 }
 0x202   : > { %v680_v4 = vpop.trf.xlu0 }
 0x203   : > { %v758_v6 = vadd.f32 %v2262_v3, %v680_v4 }
 0x204   : > { %v712_v7 = vpop.trf.xlu1 }
 0x205   : > { %v1115_v9 = vpack.c.bf16 %v758_v6, %v758_v6  ;;  %v759_v10 = vadd.f32 %v2263_v5, %v712_v7  ;;  %v2276_v5 = vld [vmem:[%s3017_s7] ss:$0 sm:$0xff] }
 0x206   : > { %v1349_v11 = vpop.trf.xlu0 }
 0x207   : > { %1120 = vst.msk [vmem:[#allocation2 + $0x8] sm:$0xf] %vm1117_vm2, %v1115_v9  ;;  %v1116_v12 = vpack.c.bf16 %v759_v10, %v759_v10  ;;  %v1489_v13 = vadd.f32 %v2292_v8, %v1349_v11 }
 0x208   : > { %v1413_v16 = vpop.trf.xlu1 }
 0x209   : > { %1121 = vst.msk [vmem:[#allocation2 + $0xc] sm:$0xf] %vm1117_vm2, %v1116_v12  ;;  %v1493_v17 = vmul.f32 0.35355338, %v1489_v13  ;;  %v1491_v21 = vadd.f32 %v2294_v15, %v1413_v16 }
 0x20a   : > { %v1381_v18 = vpop.trf.xlu0 }
 0x20b   : > { %v1497_v19 = vpack.c.bf16 %v1493_v17, %v1493_v17  ;;  %v1490_v20 = vadd.f32 %v2293_v14, %v1381_v18  ;;  %v1495_v27 = vmul.f32 0.35355338, %v1491_v21 }
 0x20d   : > { %v1494_v23 = vmul.f32 0.35355338, %v1490_v20  ;;  %2368 = vmatmul.mubr.msk.bf16.vlgmr.msra.gmra.mrb[4].mxu1 %vm1510_vm3, %v1497_v19  ;;  %v1499_v33 = vpack.c.bf16 %v1495_v27, %v1495_v27 }
 0x20e   : > { %v1503_v24 = vld [vmem:[#allocation2 + $0x8] sm:$0xf]  ;;  %v1445_v25 = vpop.trf.xlu0  ;;  %2379 = vmatprep.mubr.msk.bf16.mxu1 %vm2619_vm1, %v2618_v44 }
 0x20f   : > { %v1498_v26 = vpack.c.bf16 %v1494_v23, %v1494_v23  ;;  %v1607_v28 = vsel %vm1510_vm3, %v1503_v24, 0  ;;  %v1492_v29 = vadd.f32 %v2295_v22, %v1445_v25 }
 0x210   : > { %2378 = vmatpush3.bf16.xpose.msra.mxu1 %v1607_v28  ;;  %v1504_v30 = vld [vmem:[#allocation2 + $0xc] sm:$0xf] }
 0x211   : > { %2374 = vmatmul.mubr.msk.bf16.vlgmr.msra.gmra.mrb[8].mxu0 %vm1510_vm3, %v1498_v26  ;;  %v1653_v31 = vsel %vm1510_vm3, %v1504_v30, 0  ;;  %v1496_v32 = vmul.f32 0.35355338, %v1492_v29  ;;  %2389 = vmatprep.subr.bf16.mxu1 %v2618_v44 }
 0x212   : > { %2384 = vmatpush3.bf16.xpose.msra.mxu0 %v1653_v31  ;;  %2385 = vmatprep.mubr.msk.bf16.mxu0 %vm2619_vm1, %v2618_v44 }
 0x213   : > { %2395 = vmatprep.subr.bf16.mxu0 %v2618_v44  ;;  %v1500_v34 = vpack.c.bf16 %v1496_v32, %v1496_v32  ;;  %v2278_v32 = vld [vmem:[%s3017_s7 + $0x2] ss:$0 sm:$0xff] }
 0x217   : > { %2380 = vmatmul.mubr.msk.bf16.vlgmr.msra.gmra.mrb[8].mxu1 %vm1510_vm3, %v1499_v33 }
 0x218   : > { %2391 = vmatprep.mubr.msk.bf16.mxu1 %vm2619_vm1, %v2618_v44 }
 0x219   : > { %2386 = vmatmul.mubr.msk.bf16.vlgmr.msra.gmra.mrb[12].mxu0 %vm1510_vm3, %v1500_v34 }
 0x21a   : > { %2397 = vmatprep.mubr.msk.bf16.mxu0 %vm2619_vm1, %v2618_v44 }
 0x2b6   : > { %v2357_v35 = vpop.f32.mrb[0].mxu1 }
 0x2b7   : > { %v938_v36 = vpop.f32.mrb[1].mxu1 }
 0x2b8   : > { %953 = vxpose.xlu0.b32.start.end [1/1] (short) (narrow) %v938_v36, 8  ;;  %v2358_v37 = vpop.f32.mrb[2].mxu1 }
 0x2b9   : > { %v941_v38 = vpop.f32.mrb[3].mxu1 }
 0x2e0   : > { %v1551_v45 = vpop.f32.mrb[4].mxu1 }
 0x2e1   : > { %v1552_v46 = vadd.f32 %v1551_v45, %v1509_v43  ;;  %v2369_v47 = vpop.f32.mrb[5].mxu1 }
 0x2e2   : > { %v1554_v48 = vpop.f32.mrb[6].mxu1 }
 0x2e3   : > { %v2370_v49 = vpop.f32.mrb[7].mxu1  ;;  %v1695_v50 = vsel %vm1510_vm3, %v1552_v46, -inf }
 0x2e4   : > { %1696 = vmax.xlane.f32.xlu1 %v1695_v50  ;;  %v1597_v51 = vpop.f32.mrb[8].mxu0 }
 0x2e5   : > { %v1598_v52 = vadd.f32 %v1597_v51, %v1509_v43  ;;  %v2375_v53 = vpop.f32.mrb[9].mxu0 }
 0x2e6   : > { %v1600_v54 = vpop.f32.mrb[10].mxu0 }
 0x2e7   : > { %v2376_v55 = vpop.f32.mrb[11].mxu0  ;;  %v1698_v56 = vsel %vm1510_vm3, %v1598_v52, -inf  ;;  %v1936_v54 = vld [vmem:[%s3018_s8] sm:$0xf] }
 0x2e8   : > { %1699 = vmax.xlane.f32.xlu0 %v1698_v56  ;;  %v1944_v55 = vsel %vm1742_vm4, %v1936_v54, 0  ;;  %v1937_v56 = vld [vmem:[%s3018_s8 + $0x4] sm:$0xf] }
 0x2ea   : > { %v1643_v57 = vpop.f32.mrb[8].mxu1 }
 0x2eb   : > { %v1644_v58 = vadd.f32 %v1643_v57, %v1509_v43  ;;  %v2381_v59 = vpop.f32.mrb[9].mxu1  ;;  %v1990_v57 = vsel %vm1742_vm4, %v1937_v56, 0 }
 0x2ec   : > { %v1646_v60 = vpop.f32.mrb[10].mxu1  ;;  %v1689_v61 = vpop.f32.mrb[12].mxu0 }
 0x2ed   : > { %v1690_v62 = vadd.f32 %v1689_v61, %v1509_v43  ;;  %v2382_v63 = vpop.f32.mrb[11].mxu1  ;;  %v2387_v0 = vpop.f32.mrb[13].mxu0  ;;  %v1701_v1 = vsel %vm1510_vm3, %v1644_v58, -inf  ;;  %v1938_v61 = vld [vmem:[%s3018_s8 + $0x8] sm:$0xf] }
 0x2ee   : > { %1702 = vmax.xlane.f32.xlu1 %v1701_v1  ;;  %v1692_v2 = vpop.f32.mrb[14].mxu0 }
 0x2ef   : > { %v2388_v3 = vpop.f32.mrb[15].mxu0  ;;  %v1704_v4 = vsel %vm1510_vm3, %v1690_v62, -inf }
 0x2f0   : > { %v2036_v3 = vsel %vm1742_vm4, %v1938_v61, 0 }
 0x2f2   : > { %1705 = vmax.xlane.f32.xlu1 %v1704_v4 }
 0x315   : > { %1017 = vxpose.xlu0.b32.start.end [1/1] (short) (narrow) %v2357_v35, 8  ;;  %v2279_v35 = vld [vmem:[%s3017_s7 + $0x3] ss:$0 sm:$0xff] }
 0x319   : > { %1049 = vxpose.xlu0.b32.start.end [1/1] (short) (narrow) %v2358_v37, 8 }
 0x325   : > { %985 = vxpose.xlu1.b32.start.end [1/1] (short) (narrow) %v941_v38, 8 }
 0x338   : > { %v969_v6 = vpop.trf.xlu0 }
 0x339   : > { %v1109_v7 = vadd.f32 %v2276_v5, %v969_v6 }
 0x33b   : > { %v1122_v8 = vpack.c.bf16 %v1109_v7, %v1109_v7 }
 0x33d   : > { %1126 = vst.msk [vmem:[#allocation3] sm:$0xf] %vm1117_vm2, %v1122_v8 }
 0x344   : > { %v1735_v9 = vld [vmem:[#allocation3] sm:$0xf] }
 0x345   : > { %v1744_v10 = vsel %vm1742_vm4, %v1735_v9, 0 }
 0x346   : > { %2390 = vmatpush3.bf16.msra.mxu1 %v1744_v10 }
 0x347   : > { %2401 = vmatprep.subr.bf16.mxu1 %v2618_v44 }
 0x371   : > { %v1697_v11 = vpop.xlane.xlu1 %1696 }
 0x372   : > { %v1707_v12 = vsub.f32 %v1552_v46, %v1697_v11 }
 0x374   : > { %v1711_v13 = vmul.f32 1.442695, %v1707_v12 }
 0x375   : > { %v1700_v14 = vpop.xlane.xlu0 %1699 }
 0x376   : > { %2522 = vpow2.f32 %v1711_v13  ;;  %v1708_v15 = vsub.f32 %v1598_v52, %v1700_v14 }
 0x378   : > { %v1713_v16 = vmul.f32 1.442695, %v1708_v15 }
 0x37a   : > { %2524 = vpow2.f32 %v1713_v16  ;;  %v1939_v16 = vld [vmem:[%s3018_s8 + $0xc] sm:$0xf] }
 0x37b   : > { %v1703_v17 = vpop.xlane.xlu1 %1702 }
 0x37c   : > { %v1709_v18 = vsub.f32 %v1644_v58, %v1703_v17 }
 0x37e   : > { %v1715_v19 = vmul.f32 1.442695, %v1709_v18 }
 0x37f   : > { %v1706_v20 = vpop.xlane.xlu1 %1705 }
 0x380   : > { %v2523_v21 = vpop.eup %2522  ;;  %2526 = vpow2.f32 %v1715_v19  ;;  %v1710_v22 = vsub.f32 %v1690_v62, %v1706_v20 }
 0x381   : > { %v1719_v23 = vsel %vm1510_vm3, %v2523_v21, 0.0  ;;  %v1731_v24 = vpack.c.bf16 %v2523_v21, %v2523_v21 }
 0x382   : > { %v1717_v25 = vmul.f32 1.442695, %v1710_v22  ;;  %1720 = vadd.xlane.f32.xlu1 %v1719_v23  ;;  %v2082_v22 = vsel %vm1742_vm4, %v1939_v16, 0 }
 0x383   : > { %2392 = vmatmul.mubr.msk.bf16.vlgmr.msra.gmra.mrb[12].mxu1 %vm1510_vm3, %v1731_v24 }
 0x384   : > { %v2525_v26 = vpop.eup %2524  ;;  %2528 = vpow2.f32 %v1717_v25  ;;  %2403 = vmatprep.mubr.msk.bf16.mxu1 %vm2619_vm1, %v2618_v44 }
 0x385   : > { %v1722_v27 = vsel %vm1510_vm3, %v2525_v26, 0.0  ;;  %v1732_v51 = vpack.c.bf16 %v2525_v26, %v2525_v26 }
 0x386   : > { %1723 = vadd.xlane.f32.xlu0 %v1722_v27 }
 0x38a   : > { %v2527_v28 = vpop.eup %2526 }
 0x38b   : > { %v1725_v29 = vsel %vm1510_vm3, %v2527_v28, 0.0  ;;  %v1733_v43 = vpack.c.bf16 %v2527_v28, %v2527_v28 }
 0x38c   : > { %1726 = vadd.xlane.f32.xlu1 %v1725_v29 }
 0x38e   : > { %v2529_v30 = vpop.eup %2528 }
 0x38f   : > { %v1728_v31 = vsel %vm1510_vm3, %v2529_v30, 0.0  ;;  %v1734_v53 = vpack.c.bf16 %v2529_v30, %v2529_v30 }
 0x390   : > { %1729 = vadd.xlane.f32.xlu1 %v1728_v31 }
 0x395   : > { %v1033_v33 = vpop.trf.xlu0 }
 0x396   : > { %v1111_v34 = vadd.f32 %v2278_v32, %v1033_v33 }
 0x398   : > { %v1124_v36 = vpack.c.bf16 %v1111_v34, %v1111_v34 }
 0x399   : > { %v1065_v37 = vpop.trf.xlu0 }
 0x39a   : > { %1128 = vst.msk [vmem:[#allocation3 + $0x8] sm:$0xf] %vm1117_vm2, %v1124_v36  ;;  %v1112_v38 = vadd.f32 %v2279_v35, %v1065_v37 }
 0x39c   : > { %v1125_v39 = vpack.c.bf16 %v1112_v38, %v1112_v38 }
 0x39e   : > { %1129 = vst.msk [vmem:[#allocation3 + $0xc] sm:$0xf] %vm1117_vm2, %v1125_v39 }
 0x3a1   : > { %v1737_v40 = vld [vmem:[#allocation3 + $0x8] sm:$0xf] }
 0x3a2   : > { %v1836_v41 = vsel %vm1742_vm4, %v1737_v40, 0 }
 0x3a3   : > { %2402 = vmatpush3.bf16.msra.mxu1 %v1836_v41 }
 0x3a4   : > { %2413 = vmatprep.subr.bf16.mxu1 %v2618_v44 }
 0x3a5   : > { %v1001_v45 = vpop.trf.xlu1  ;;  %v1738_v49 = vld [vmem:[#allocation3 + $0xc] sm:$0xf] }
 0x3a6   : > { %v1110_v46 = vadd.f32 %v2277_v42, %v1001_v45  ;;  %2404 = vmatmul.mubr.msk.bf16.vlgmr.msra.gmra.mrb[16].mxu1 %vm1510_vm3, %v1733_v43  ;;  %v1882_v52 = vsel %vm1742_vm4, %v1738_v49, 0  ;;  %v2309_v49 = vld [vmem:[%s3019_s9] ss:$0 sm:$0xff] }
 0x3a7   : > { %2415 = vmatprep.mubr.msk.bf16.mxu1 %vm2619_vm1, %v2618_v44  ;;  %2414 = vmatpush3.bf16.msra.mxu1 %v1944_v55 }
 0x3a8   : > { %v1123_v47 = vpack.c.bf16 %v1110_v46, %v1110_v46  ;;  %2425 = vmatprep.subr.bf16.mxu1 %v2618_v44 }
 0x3aa   : > { %1127 = vst.msk [vmem:[#allocation3 + $0x4] sm:$0xf] %vm1117_vm2, %v1123_v47 }
 0x3b1   : > { %v1736_v48 = vld [vmem:[#allocation3 + $0x4] sm:$0xf] }
 0x3b2   : > { %v1790_v50 = vsel %vm1742_vm4, %v1736_v48, 0 }
 0x3b3   : > { %2396 = vmatpush3.bf16.msra.mxu0 %v1790_v50 }
 0x3b4   : > { %2407 = vmatprep.subr.bf16.mxu0 %v2618_v44 }
 0x3b6   : > { %2398 = vmatmul.mubr.msk.bf16.vlgmr.msra.gmra.mrb[16].mxu0 %vm1510_vm3, %v1732_v51 }
 0x3b7   : > { %2408 = vmatpush3.bf16.msra.mxu0 %v1882_v52  ;;  %2409 = vmatprep.mubr.msk.bf16.mxu0 %vm2619_vm1, %v2618_v44 }
 0x3b8   : > { %2419 = vmatprep.subr.bf16.mxu0 %v2618_v44 }
 0x3be   : > { %2410 = vmatmul.mubr.msk.bf16.vlgmr.msra.gmra.mrb[20].mxu0 %vm1510_vm3, %v1734_v53 }
 0x3bf   : > { %2421 = vmatprep.mubr.msk.bf16.mxu0 %vm2619_vm1, %v2618_v44  ;;  %2420 = vmatpush3.bf16.msra.mxu0 %v1990_v57 }
 0x3c0   : > { %2431 = vmatprep.subr.bf16.mxu0 %v2618_v44 }
 0x40f   : > { %v1721_v58 = vpop.xlane.xlu1 %1720 }
 0x410   : > { %2530 = vrcp.f32 %v1721_v58 }
 0x413   : > { %v1724_v10 = vpop.xlane.xlu0 %1723 }
 0x419   : > { %v1727_v4 = vpop.xlane.xlu1 %1726 }
 0x41a   : > { %v2531_v59 = vpop.eup %2530  ;;  %2532 = vrcp.f32 %v1727_v4 }
 0x41b   : > { %2534 = vrcp.f32 %v1724_v10 }
 0x41d   : > { %v1730_v13 = vpop.xlane.xlu1 %1729 }
 0x41e   : > { %2536 = vrcp.f32 %v1730_v13 }
 0x424   : > { %v2533_v5 = vpop.eup %2532 }
 0x425   : > { %v2535_v14 = vpop.eup %2534 }
 0x428   : > { %v2537_v23 = vpop.eup %2536 }
 0x456   : > { %v1780_v60 = vpop.f32.mrb[12].mxu1 }
 0x457   : > { %v1928_v62 = vmul.f32 %v2531_v59, %v1780_v60  ;;  %v2393_v63 = vpop.f32.mrb[13].mxu1 }
 0x458   : > { %v1783_v0 = vpop.f32.mrb[14].mxu1 }
 0x459   : > { %v1932_v1 = vpack.c.bf16 %v1928_v62, %v1928_v62  ;;  %v2394_v2 = vpop.f32.mrb[15].mxu1 }
 0x45b   : > { %2416 = vmatmul.mubr.msk.bf16.vlgmr.msra.gmra.mrb[20].mxu1 %vm1510_vm3, %v1932_v1 }
 0x45c   : > { %2426 = vmatpush3.bf16.msra.mxu1 %v2036_v3  ;;  %2427 = vmatprep.mubr.msk.bf16.mxu1 %vm2619_vm1, %v2618_v44 }
 0x479   : > { %v1872_v6 = vpop.f32.mrb[16].mxu1 }
 0x47a   : > { %v1930_v7 = vmul.f32 %v2533_v5, %v1872_v6  ;;  %v2405_v8 = vpop.f32.mrb[17].mxu1 }
 0x47b   : > { %v1875_v9 = vpop.f32.mrb[18].mxu1 }
 0x47c   : > { %v1934_v11 = vpack.c.bf16 %v1930_v7, %v1930_v7  ;;  %v2406_v12 = vpop.f32.mrb[19].mxu1 }
 0x47e   : > { %2428 = vmatmul.mubr.msk.bf16.vlgmr.msra.gmra.mrb[24].mxu1 %vm1510_vm3, %v1934_v11 }
 0x489   : > { %v1826_v15 = vpop.f32.mrb[16].mxu0 }
 0x48a   : > { %v1929_v17 = vmul.f32 %v2535_v14, %v1826_v15  ;;  %v2399_v18 = vpop.f32.mrb[17].mxu0 }
 0x48b   : > { %v1829_v19 = vpop.f32.mrb[18].mxu0 }
 0x48c   : > { %v1933_v20 = vpack.c.bf16 %v1929_v17, %v1929_v17  ;;  %v2400_v21 = vpop.f32.mrb[19].mxu0 }
 0x48e   : > { %2422 = vmatmul.mubr.msk.bf16.vlgmr.msra.gmra.mrb[24].mxu0 %vm1510_vm3, %v1933_v20 }
 0x48f   : > { %2432 = vmatpush3.bf16.msra.mxu0 %v2082_v22  ;;  %2433 = vmatprep.mubr.msk.bf16.mxu0 %vm2619_vm1, %v2618_v44 }
 0x491   : > { %v1918_v24 = vpop.f32.mrb[20].mxu0 }
 0x492   : > { %v1931_v25 = vmul.f32 %v2537_v23, %v1918_v24  ;;  %v2411_v26 = vpop.f32.mrb[21].mxu0 }
 0x493   : > { %v1921_v27 = vpop.f32.mrb[22].mxu0 }
 0x494   : > { %v1935_v28 = vpack.c.bf16 %v1931_v25, %v1931_v25  ;;  %v2412_v29 = vpop.f32.mrb[23].mxu0 }
 0x496   : > { %2434 = vmatmul.mubr.msk.bf16.vlgmr.msra.gmra.mrb[28].mxu0 %vm1510_vm3, %v1935_v28 }
 0x52e   : > { %v1980_v30 = vpop.f32.mrb[20].mxu1 }
 0x52f   : > { %v2417_v31 = vpop.f32.mrb[21].mxu1  ;;  %v2124_v38 = vsel %vm541_vm0, %v1980_v30, 0.0 }
 0x530   : > { %v1983_v32 = vpop.f32.mrb[22].mxu1 }
 0x531   : > { %v2418_v33 = vpop.f32.mrb[23].mxu1 }
 0x551   : > { %v2072_v34 = vpop.f32.mrb[24].mxu1 }
 0x552   : > { %v2429_v35 = vpop.f32.mrb[25].mxu1  ;;  %v2127_v43 = vsel %vm541_vm0, %v2072_v34, 0.0 }
 0x553   : > { %v2075_v36 = vpop.f32.mrb[26].mxu1 }
 0x554   : > { %v2430_v37 = vpop.f32.mrb[27].mxu1 }
 0x561   : > { %v2026_v44 = vpop.f32.mrb[24].mxu0 }
 0x562   : > { %v2125_v39 = vsel %vm541_vm0, %v2026_v44, 0.0  ;;  %v2423_v40 = vpop.f32.mrb[25].mxu0 }
 0x563   : > { %v2126_v41 = vadd.f32 %v2125_v39, %v2124_v38  ;;  %v2029_v42 = vpop.f32.mrb[26].mxu0 }
 0x564   : > { %v2424_v45 = vpop.f32.mrb[27].mxu0 }
 0x565   : > { %v2128_v46 = vadd.f32 %v2127_v43, %v2126_v41 }
 0x569   : > { %v2118_v47 = vpop.f32.mrb[28].mxu0 }
 0x56a   : > { %v2129_v48 = vsel %vm541_vm0, %v2118_v47, 0.0  ;;  %v2435_v50 = vpop.f32.mrb[29].mxu0 }
 0x56b   : > { %v2130_v51 = vadd.f32 %v2129_v48, %v2128_v46  ;;  %v2121_v52 = vpop.f32.mrb[30].mxu0 }
 0x56c   : > { %v2436_v53 = vpop.f32.mrb[31].mxu0 }
 0x56d   : > { %v2138_v54 = vadd.f32 %v2309_v49, %v2130_v51 }
 0x56f   : > { %2139 = vst.msk [vmem:[%s385_s12] sm:$0xff] %vm541_vm0, %v2138_v54 }
 0x570   : > { %2551 = shalt.err (!%p2548_p5)
}
 0x571   : > { %s2552_s24 = scalar_lea.hbm %s2962_s21, 128  ;;  %s2556_s12 = scalar_lea.hbm %s3020_s10, 256 }
 0x572   : > { %p2553_p6 = scmp.ne.s32.totalorder %s2962_s21, %s2552_s24  ;;  %p2557_p10 = scmp.lt.u32.totalorder %s2962_s21, %s3020_s10 }
 0x573   : > { %p2558_p11 = scmp.lt.u32.totalorder %s2556_s12, %s2552_s24  ;;  %p2560_p13 = scmp.lt.u32.totalorder %s2552_s24, %s2962_s21 }
 0x574   : > { %p2554_p7 = pnand %p2553_p6, %p2716_p4 }
 0x575   : > { %p2559_p12 = por %p2558_p11, %p2557_p10 }
 0x576   : > { %p2555_p9 = pneg %p2554_p7 }
 0x577   : > { %p2561_p0 = por %p2560_p13, %p2559_p12 }
 0x579   : > { %p2562_p1 = pnand %p2561_p0, %p2555_p9 }
 0x57b   : > { %2565 = shalt.err (!%p2562_p1)
}
 0x57c   : > { %2440 = dma.vmem_to_hbm [thread:$0]  (%p2716_p4), %s2964_s17, 128, %s2962_s21, %s2141_s20  }
 0x57d PF: > { %p2446_p2 = scmp.ge.s32.totalorder %s2616_s18, 2  ;;  %s2167_s16 = sand.u32 1, %s2596_s13  }
 0x57e   : > { %s2168_s22 = scalar_lea.sflag [#allocation5], %s2167_s16 }
 0x57f   : > { %p2443_p3 = pnand %p2446_p2, %p2723_p8 }
 0x581   : > { %2591 = dma.done.wait (!%p2443_p3), %s2168_s22, 128  }
 0x582   : > { %2593 = vsyncadd (!%p2443_p3), %s2168_s22, 4294967168  ;;  %s23_s18 = sadd.s32 1, %s2616_s18   ;;  %s3027_s16 = sld [smem:[#allocation7_spill]] }
 0x583   : > { %p20_p5 = scmp.ge.s32.totalorder %s23_s18, 4   ;;  %s3028_s17 = sld [smem:[#allocation8_spill]] }
 0x584   : > { %s3029_s13 = smov %s2600_s14  ;;  %s3030_s14 = smov %s2604_s15 }
 0x585   : > { %s3031_s15 = smov %s2729_s26  ;;  %22 = sbr.rel (!%p20_p5) target bundleno = 4 (0x4), region = 103 }
 0x58c   :  { %2173 = vsyncpa [#allocation5], 1 }
 0x58d   :  { %2175 = vsyncpa [#allocation5 + $0x1], 1 }

</bundles_post_ra>
